<compile_context>
chip_gen: v5e
topology: v5e:2x2
jax: 0.10.0
libtpu: 0.0.40
codegen_flags: <defaults>
</compile_context>

<pallas_src>
import functools
import math

import jax
import jax.numpy as jnp
import numpy as np
from jax.experimental import pallas as pl
from jax.experimental.pallas import tpu as pltpu

_LANES = 128                                      # vreg lane width (last dim lane-dense)
_SUBLANES_FOR_ITEMSIZE = {4: 8, 2: 16, 1: 32}     # native sublane packing per dtype width
_MAX_BLOCK_BYTES = 4 * 1024 * 1024                # ~4 MiB per block per buffer
_MIN_SPLIT_BYTES = 2 * 1024 * 1024                # >=2 MiB inputs get >=2 grid steps (v7x megacore)
_VMEM_LIMIT_BYTES = 32 * 1024 * 1024              # 4 x 4 MiB double-buffered blocks + headroom


# ----------------------- activation definitions (match the PyTorch module) -----------
def _gelu_new(x):
    # "gelu_new" tanh approximation (Google BERT / OpenAI GPT form). tanh -> EUP slot.
    c = math.sqrt(2.0 / math.pi)
    return 0.5 * x * (1.0 + jnp.tanh(c * (x + 0.044715 * x * x * x)))


def _swish(x):
    # x * sigmoid(x).  The f32 divide lowers to an EUP reciprocal + VPU multiply;
    # the kernel is HBM-bound so compute is not the binding slot either way.
    return x * (1.0 / (1.0 + jnp.exp(-x)))


def _leaky_relu(x):
    # torch.nn.functional.leaky_relu default negative_slope = 0.01
    return jnp.where(x >= 0, x, x * jnp.asarray(0.01, x.dtype))


# name -> (fn, compute_in_f32, transcendentals_per_elem, ~flops_per_elem)
_ACTIVATIONS = {
    "relu":      (lambda x: jnp.maximum(x, 0), False, 0, 1),
    "tanh":      (jnp.tanh,                    True,  1, 1),
    "swish":     (_swish,                      True,  1, 4),
    "gelu":      (_gelu_new,                   True,  1, 8),
    "leakyrelu": (_leaky_relu,                 False, 0, 2),
}


# ----------------------- Pallas kernel ------------------------------------------------
def _act_kernel(x_ref, o_ref, *, act, upcast):
    # Whole (block_rows, 128) lane-dense tile: full-vreg loads/stores, element-wise math.
    x = x_ref[...]
    if upcast:
        x = x.astype(jnp.float32)
    o_ref[...] = act(x).astype(o_ref.dtype)


# ----------------------- helpers ------------------------------------------------------
def _cdiv(a, b):
    return -(-a // b)


def _round_up(a, b):
    return _cdiv(a, b) * b


# ----------------------- wrapper -------------------------------------------------------
@functools.partial(jax.jit, static_argnames=("hidden_act",))
def activation_forward(x, hidden_act="gelu"):
    """Pallas TPU implementation of Activation_Function_Class(hidden_act)(x)."""
    name = hidden_act.lower()
    if name not in _ACTIVATIONS:
        # TODO(synk): PyTorch silently leaves self.f undefined for unknown strings
        # (deferred failure at forward); here we fail eagerly at trace time instead.
        raise ValueError(f"unsupported hidden_act: {hidden_act!r}")
    act, upcast, n_trans, n_flops = _ACTIVATIONS[name]

    orig_shape, orig_dtype = x.shape, x.dtype
    n = x.size
    if n == 0:
        return x

    itemsize = jnp.dtype(orig_dtype).itemsize
    sublanes = _SUBLANES_FOR_ITEMSIZE.get(itemsize, 8)
    max_block_rows = max(
        sublanes,
        (_MAX_BLOCK_BYTES // (_LANES * itemsize)) // sublanes * sublanes,
    )

    rows_needed = _round_up(_cdiv(n, _LANES), sublanes)

    # Block sizing: biggest blocks that fit the VMEM budget; force >= 2 grid steps for
    # inputs above _MIN_SPLIT_BYTES so the "parallel" axis can shard across v7x's two
    # TensorCores; block_rows is derived from the block count (not a full-block round-up)
    # so residual padding stays <= `sublanes` rows per block.
    min_blocks = 2 if rows_needed * _LANES * itemsize >= _MIN_SPLIT_BYTES else 1
    num_blocks = max(min_blocks, _cdiv(rows_needed, max_block_rows))
    block_rows = _round_up(_cdiv(rows_needed, num_blocks), sublanes)
    rows = block_rows * num_blocks
    padded = rows * _LANES

    x_flat = x.reshape(-1)
    if padded != n:
        # TODO(synk): for very large ragged inputs, process the aligned prefix zero-copy
        # and the tiny tail separately instead of padding the whole tensor (saves one
        # extra HBM read+write of the full array). Aligned inputs already skip this path.
        x_flat = jnp.pad(x_flat, (0, padded - n))
    x2d = x_flat.reshape(rows, _LANES)

    cost = pl.CostEstimate(
        flops=n_flops * n,
        transcendentals=n_trans * n,
        bytes_accessed=2 * n * itemsize,
    )

    out = pl.pallas_call(
        functools.partial(_act_kernel, act=act, upcast=upcast),
        out_shape=jax.ShapeDtypeStruct((rows, _LANES), orig_dtype),
        grid=(num_blocks,),
        in_specs=[pl.BlockSpec((block_rows, _LANES), lambda i: (i, 0))],
        out_specs=pl.BlockSpec((block_rows, _LANES), lambda i: (i, 0)),
        compiler_params=pltpu.CompilerParams(
            dimension_semantics=("parallel",),
            vmem_limit_bytes=_VMEM_LIMIT_BYTES,
        ),
        cost_estimate=cost,
    )(x2d)

    out_flat = out.reshape(-1)
    if padded != n:
        out_flat = out_flat[:n]
    return out_flat.reshape(orig_shape)


# ----------------------- pure-JAX reference (correctness check) ----------------------
def ref_forward(x, hidden_act):
    act, upcast, _, _ = _ACTIVATIONS[hidden_act.lower()]
    xc = x.astype(jnp.float32) if upcast else x
    return act(xc).astype(x.dtype)


if __name__ == "__main__":
    key = jax.random.PRNGKey(0)
    # hidden-states-like input: (batch=2, seq=8, hidden=32)
    x = jax.random.normal(key, (2, 8, 32), jnp.float32)

    for act_name in ("gelu", "relu", "tanh", "swish", "leakyrelu"):
        out = jax.block_until_ready(activation_forward(x, act_name))
        ref = jax.block_until_ready(ref_forward(x, act_name))
        np.testing.assert_allclose(np.asarray(out), np.asarray(ref),
                                   rtol=1e-5, atol=1e-5)

    # ragged (pad/slice) path
    x_ragged = jax.random.normal(jax.random.PRNGKey(0), (3, 5, 7), jnp.float32)
    out_r = jax.block_until_ready(activation_forward(x_ragged, "gelu"))
    np.testing.assert_allclose(np.asarray(out_r), np.asarray(ref_forward(x_ragged, "gelu")),
                               rtol=1e-5, atol=1e-5)

    # bf16 native-dtype (no upcast) path
    x_bf16 = jax.random.normal(jax.random.PRNGKey(0), (2, 8, 32), jnp.bfloat16)
    out_b = jax.block_until_ready(activation_forward(x_bf16, "relu"))
    np.testing.assert_allclose(np.asarray(out_b.astype(jnp.float32)),
                               np.asarray(ref_forward(x_bf16, "relu").astype(jnp.float32)),
                               rtol=0, atol=0)

    print("KERNEL_OK")
</pallas_src>

<mosaic_0001>
module attributes {stable_mosaic.version = 11 : i64} {
  func.func @_act_kernel(%arg0: i32, %arg1: memref<8x128xf32, #tpu.memory_space<vmem>>, %arg2: memref<8x128xf32, #tpu.memory_space<vmem>>) attributes {dimension_semantics = [#tpu.dimension_semantics<parallel>], iteration_bounds = array<i64: 1>, scalar_prefetch = 0 : i64, scratch_operands = 0 : i64, tpu.core_type = #tpu.core_type<tc>, window_params = [{transform_indices = @transform_0, window_bounds = array<i64: 8, 128>}, {transform_indices = @transform_1, window_bounds = array<i64: 8, 128>}]} {
    %c0 = arith.constant 0 : index
    %c0_0 = arith.constant 0 : index
    %0 = vector.load %arg1[%c0, %c0_0] : memref<8x128xf32, #tpu.memory_space<vmem>>, vector<8x128xf32>
    %cst = arith.constant 5.000000e-01 : f32
    %1 = vector.broadcast %cst : f32 to vector<8x128xf32>
    %2 = arith.mulf %1, %0 : vector<8x128xf32>
    %cst_1 = arith.constant 4.471500e-02 : f32
    %3 = vector.broadcast %cst_1 : f32 to vector<8x128xf32>
    %4 = arith.mulf %3, %0 : vector<8x128xf32>
    %5 = arith.mulf %4, %0 : vector<8x128xf32>
    %6 = arith.mulf %5, %0 : vector<8x128xf32>
    %7 = arith.addf %0, %6 : vector<8x128xf32>
    %cst_2 = arith.constant 0.797884583 : f32
    %8 = vector.broadcast %cst_2 : f32 to vector<8x128xf32>
    %9 = arith.mulf %8, %7 : vector<8x128xf32>
    %10 = math.tanh %9 : vector<8x128xf32>
    %cst_3 = arith.constant 1.000000e+00 : f32
    %11 = vector.broadcast %cst_3 : f32 to vector<8x128xf32>
    %12 = arith.addf %11, %10 : vector<8x128xf32>
    %13 = arith.mulf %2, %12 : vector<8x128xf32>
    %c0_4 = arith.constant 0 : index
    %c0_5 = arith.constant 0 : index
    %14 = vector.load %arg2[%c0_4, %c0_5] : memref<8x128xf32, #tpu.memory_space<vmem>>, vector<8x128xf32>
    tpu.vector_store %arg2[%c0_4, %c0_5], %13 {strides = array<i32>} : memref<8x128xf32, #tpu.memory_space<vmem>>, vector<8x128xf32>,
    return
  }
  func.func @transform_0(%arg0: i32) -> (i32, i32) {
    %c0_i32 = arith.constant 0 : i32
    %c0_i32_0 = arith.constant 0 : i32
    return %arg0, %c0_i32 : i32, i32
  }
  func.func @transform_1(%arg0: i32) -> (i32, i32) {
    %c0_i32 = arith.constant 0 : i32
    %c0_i32_0 = arith.constant 0 : i32
    return %arg0, %c0_i32 : i32, i32
  }
}

</mosaic_0001>

<bundles_post_ra>
// kernel: activation_forward.1
= control target key start
LH: loop header
LB: loop body
LE: loop exit
PB: predicated region body
PF: predicated region fallthrough
CT: control target
= control target key end

     0   :  { %s41_s0 = inlined_call_operand.vmem [shape: f32[8,128], index: 0, kind: input, shape index: {}]   ;;  %s42_s1 = inlined_call_operand.vmem [shape: f32[8,128], index: 1, kind: output, shape index: {}]  }
   0x1   :  { %v8_v0 = vld [vmem:[%s41_s0] sm:$0xff] }
   0x2   :  { %v10_v1 = vmul.f32 0.044715, %v8_v0  ;;  %v9_v6 = vmul.f32 0.5, %v8_v0 }
   0x4   :  { %v11_v2 = vmul.f32 %v10_v1, %v8_v0 }
   0x6   :  { %v12_v3 = vmul.f32 %v11_v2, %v8_v0 }
   0x8   :  { %v13_v4 = vadd.f32 %v12_v3, %v8_v0 }
   0xa   :  { %v14_v5 = vmul.f32 0.7978846, %v13_v4 }
   0xc   :  { %23 = vtanh.f32 %v14_v5 }
  0x12   :  { %v24_v7 = vpop.eup %23 }
  0x13   :  { %v16_v8 = vadd.f32 1.0, %v24_v7 }
  0x15   :  { %v17_v9 = vmul.f32 %v16_v8, %v9_v6 }
  0x17   :  { %18 = vst [vmem:[%s42_s1] sm:$0xff] %v17_v9 }

</bundles_post_ra>
